<compile_context>
chip_gen: v5e
topology: v5e:2x2
jax: 0.10.0
libtpu: 0.0.40
codegen_flags: <defaults>
</compile_context>

<pallas_src>
import functools

import jax
import jax.numpy as jnp
from jax.experimental import pallas as pl
from jax.experimental.pallas import tpu as pltpu

_LANE_CHOICES = (512, 256, 128)          # lane-dense widths (multiples of 128)
_MAX_TILE_BYTES = 2 * 1024 * 1024        # per-tile budget; 4x = 8 MiB working set
_TARGET_BLOCKS = 8                       # aim for ~8 grid steps for pipelining
_DEFAULT_MIN_PALLAS_BYTES = 512 * 1024   # below this, fused XLA multiply wins


def _round_up(a: int, b: int) -> int:
    return ((a + b - 1) // b) * b


def _scale_kernel(scale_ref, x_ref, o_ref):
    # scale lives in SMEM as a (1,1) f32 scalar; broadcast-multiply on the VPU.
    s = scale_ref[0, 0].astype(x_ref.dtype)
    o_ref[...] = x_ref[...] * s


def _pick_tile_rows(rows: int, sublane: int, itemsize: int, lanes: int) -> int:
    """Choose a row-tile that yields ~_TARGET_BLOCKS pipelined grid steps."""
    max_tile_rows = max(
        sublane, (_MAX_TILE_BYTES // (lanes * itemsize)) // sublane * sublane
    )
    if rows <= sublane:
        # Full-extent row block (legal even though < sublane granularity).
        return rows
    tile = _round_up(pl.cdiv(rows, _TARGET_BLOCKS), sublane)
    tile = max(sublane, min(tile, max_tile_rows, _round_up(rows, sublane)))
    num_blocks = pl.cdiv(rows, tile)
    # v7x megacore: prefer an even (balanced) block count when the grid is small.
    if 1 < num_blocks <= 16 and num_blocks % 2 == 1:
        alt = _round_up(pl.cdiv(rows, num_blocks + 1), sublane)
        alt = max(sublane, min(alt, max_tile_rows))
        if pl.cdiv(rows, alt) % 2 == 0:
            tile = alt
    return tile


@functools.partial(jax.jit, static_argnames=("min_pallas_bytes",))
def scale_forward(x: jax.Array, scale, *, min_pallas_bytes: int = _DEFAULT_MIN_PALLAS_BYTES):
    """Equivalent of Scale(scale).forward(x) = x * scale."""
    dtype = x.dtype
    total = int(x.size)
    itemsize = jnp.dtype(dtype).itemsize
    nbytes = total * itemsize

    is_float = jnp.issubdtype(dtype, jnp.floating)
    if is_float:
        scale_val = jnp.asarray(scale, dtype=dtype)
    else:
        # TODO(synk): integer-input promotion follows JAX rules here, not PyTorch's.
        scale_val = jnp.asarray(scale)

    # Largest lane width (multiple of 128) that divides the element count.
    lanes = next((l for l in _LANE_CHOICES if total % l == 0), None)

    # Fallback: tiny inputs, ragged totals, or non-float dtypes -> fused XLA
    # multiply (already 1 read + 1 write; a Pallas launch would add overhead).
    if (lanes is None) or (nbytes < min_pallas_bytes) or (not is_float):
        return x * scale_val

    rows = total // lanes
    sublane = {4: 8, 2: 16, 1: 32}.get(itemsize, 8)
    tile_rows = _pick_tile_rows(rows, sublane, itemsize, lanes)
    num_blocks = pl.cdiv(rows, tile_rows)

    x2d = x.reshape(rows, lanes)                       # free contiguous reshape
    scale2d = jnp.asarray(scale, dtype=jnp.float32).reshape(1, 1)

    out2d = pl.pallas_call(
        _scale_kernel,
        out_shape=jax.ShapeDtypeStruct((rows, lanes), dtype),
        grid=(num_blocks,),
        in_specs=[
            pl.BlockSpec(memory_space=pltpu.MemorySpace.SMEM),      # scale scalar
            pl.BlockSpec((tile_rows, lanes), lambda i: (i, 0)),     # x tile
        ],
        out_specs=pl.BlockSpec((tile_rows, lanes), lambda i: (i, 0)),
        compiler_params=pltpu.CompilerParams(
            dimension_semantics=("parallel",),  # megacore sharding on v7x
        ),
    )(scale2d, x2d)

    return out2d.reshape(x.shape)                      # free contiguous reshape


if __name__ == "__main__":
    key = jax.random.PRNGKey(0)
    k1, k2, k3 = jax.random.split(key, 3)
    scale = 1.0 / 255.0

    # 1) Small shape (2,4,16,16) through the Pallas path (threshold overridden):
    #    total=2048 -> lanes=512, rows=4, single full-extent block.
    x_small = jax.random.uniform(
        k1, (2, 4, 16, 16), dtype=jnp.float32, minval=0.0, maxval=255.0
    )
    y_small = scale_forward(x_small, scale, min_pallas_bytes=0)
    jax.block_until_ready(y_small)
    ref_small = x_small * scale
    assert y_small.shape == x_small.shape and y_small.dtype == x_small.dtype
    assert jnp.allclose(y_small, ref_small, rtol=1e-6, atol=1e-6)

    # 2) Same small input through the default threshold (XLA fallback path).
    y_small2 = scale_forward(x_small, scale)
    jax.block_until_ready(y_small2)
    assert jnp.allclose(y_small2, ref_small, rtol=1e-6, atol=1e-6)

    # 3) Atari-sized batch: Pallas path with an 8-step grid, ragged final
    #    row-block (masked by Pallas), no wrapper-side pad or slice.
    x_big = jax.random.uniform(
        k2, (32, 4, 84, 84), dtype=jnp.float32, minval=0.0, maxval=255.0
    )
    y_big = scale_forward(x_big, scale)
    jax.block_until_ready(y_big)
    ref_big = x_big * scale
    assert y_big.shape == x_big.shape and y_big.dtype == x_big.dtype
    assert jnp.allclose(y_big, ref_big, rtol=1e-6, atol=1e-6)

    # 4) Ragged element count (not 128-divisible): correctness via XLA fallback.
    x_ragged = jax.random.uniform(
        k3, (3, 5, 7), dtype=jnp.float32, minval=0.0, maxval=255.0
    )
    y_ragged = scale_forward(x_ragged, scale)
    jax.block_until_ready(y_ragged)
    assert jnp.allclose(y_ragged, x_ragged * scale, rtol=1e-6, atol=1e-6)

    print("KERNEL_OK")
</pallas_src>

<mosaic_0001>
module attributes {stable_mosaic.version = 11 : i64} {
  func.func @_scale_kernel(%arg0: i32, %arg1: memref<1x1xf32, #tpu.memory_space<smem>>, %arg2: memref<4x512xf32, #tpu.memory_space<vmem>>, %arg3: memref<4x512xf32, #tpu.memory_space<vmem>>) attributes {dimension_semantics = [#tpu.dimension_semantics<parallel>], iteration_bounds = array<i64: 1>, scalar_prefetch = 0 : i64, scratch_operands = 0 : i64, tpu.core_type = #tpu.core_type<tc>, window_params = [{transform_indices = @transform_0, window_bounds = array<i64: 1, 1>}, {transform_indices = @transform_1, window_bounds = array<i64: 4, 512>}, {transform_indices = @transform_2, window_bounds = array<i64: 4, 512>}]} {
    %c0 = arith.constant 0 : index
    %c0_0 = arith.constant 0 : index
    %0 = memref.load %arg1[%c0, %c0_0] : memref<1x1xf32, #tpu.memory_space<smem>>
    %c0_1 = arith.constant 0 : index
    %c0_2 = arith.constant 0 : index
    %1 = vector.load %arg2[%c0_1, %c0_2] : memref<4x512xf32, #tpu.memory_space<vmem>>, vector<4x512xf32>
    %2 = vector.broadcast %0 : f32 to vector<4x512xf32>
    %3 = arith.mulf %1, %2 : vector<4x512xf32>
    %c0_3 = arith.constant 0 : index
    %c0_4 = arith.constant 0 : index
    %4 = vector.load %arg3[%c0_3, %c0_4] : memref<4x512xf32, #tpu.memory_space<vmem>>, vector<4x512xf32>
    tpu.vector_store %arg3[%c0_3, %c0_4], %3 {strides = array<i32>} : memref<4x512xf32, #tpu.memory_space<vmem>>, vector<4x512xf32>,
    return
  }
  func.func @transform_0(%arg0: i32) -> (i32, i32) {
    %c0_i32 = arith.constant 0 : i32
    %c0_i32_0 = arith.constant 0 : i32
    %c0_i32_1 = arith.constant 0 : i32
    return %c0_i32, %c0_i32_0 : i32, i32
  }
  func.func @transform_1(%arg0: i32) -> (i32, i32) {
    %c0_i32 = arith.constant 0 : i32
    %c0_i32_0 = arith.constant 0 : i32
    return %arg0, %c0_i32 : i32, i32
  }
  func.func @transform_2(%arg0: i32) -> (i32, i32) {
    %c0_i32 = arith.constant 0 : i32
    %c0_i32_0 = arith.constant 0 : i32
    return %arg0, %c0_i32 : i32, i32
  }
}

</mosaic_0001>

<bundles_post_ra>
// kernel: scale_forward.1
= control target key start
LH: loop header
LB: loop body
LE: loop exit
PB: predicated region body
PF: predicated region fallthrough
CT: control target
= control target key end

     0   :  { %s54_s0 = inlined_call_operand.<no memory space> [shape: f32[1,1], index: 0, kind: input, shape index: {}]   ;;  %s55_s1 = inlined_call_operand.vmem [shape: f32[4,512], index: 1, kind: input, shape index: {}]   ;;  %s56_s2 = inlined_call_operand.vmem [shape: f32[4,512], index: 2, kind: output, shape index: {}]  }
   0x1   :  { %v13_v0 = vld [vmem:[%s55_s1] sm:$0xff]  ;;  %v15_v1 = vstv %s54_s0  ;;  %v14_v2 = vld [vmem:[%s55_s1 + $0x8] sm:$0xff] }
   0x2   :  { %v16_v3 = vmul.f32 %v15_v1, %v13_v0  ;;  %v17_v4 = vmul.f32 %v15_v1, %v14_v2 }
   0x4   :  { %18 = vst [vmem:[%s56_s2] sm:$0xff] %v16_v3 }
   0x5   :  { %19 = vst [vmem:[%s56_s2 + $0x8] sm:$0xff] %v17_v4 }

</bundles_post_ra>
